<compile_context>
chip_gen: v7x
topology: tpu7x:2x2x1
jax: 0.10.0
libtpu: 0.0.40
codegen_flags: <defaults>
</compile_context>

<pallas_src>
import numpy as np
import jax
import jax.numpy as jnp
from jax.experimental import pallas as pl
from jax.experimental.pallas import tpu as pltpu


# ----------------------------------------------------------------------------
# Kernel
# ----------------------------------------------------------------------------
def _make_embedding_kernel(h, k, in_size, out_size):
    def kernel(z_ref, w_ref, b_ref, o_ref):
        # One lane-dense MXU matmul for all h*k embedding vectors:
        #   y[m, r*out_size + c] = sum_e z[m, e] * W_eff[e, r*out_size + c] + b_eff[...]
        # shapes: (h*k, z_dim) @ (z_dim, in_size*out_size) -> (h*k, in_size*out_size)
        y = jnp.dot(z_ref[...], w_ref[...], preferred_element_type=jnp.float32)
        y = y + b_ref[...]                                     # bias broadcast over rows

        # torch.cat layout:
        #   out[i*in_size + r, j*out_size + c] = y[i*k + j, r*out_size + c]
        # Assemble in-register with static lane slices + concats, then one
        # full-width, lane-dense store of the whole (h*in_size, k*out_size) block.
        rows = []
        for i in range(h):
            for r in range(in_size):
                pieces = [
                    y[i * k + j:i * k + j + 1, r * out_size:(r + 1) * out_size]
                    for j in range(k)
                ]
                rows.append(jnp.concatenate(pieces, axis=1))   # (1, k*out_size)
        o_ref[...] = jnp.concatenate(rows, axis=0).astype(o_ref.dtype)

    return kernel


# ----------------------------------------------------------------------------
# Wrapper: fold the linear hypernet layers, single pallas_call
# ----------------------------------------------------------------------------
def embedding_forward(z_stack, w2, b2, w1, b1, *, z_num, z_dim, in_size, out_size):
    h, k = z_num
    hk = h * k
    assert z_stack.shape == (hk, z_dim)
    assert w2.shape == (z_dim, in_size * z_dim) and b2.shape == (in_size * z_dim,)
    assert w1.shape == (z_dim, out_size) and b1.shape == (out_size,)

    # Parameter-only prep (plain JAX, one pass over the params): fold the two
    # linear layers.  Lane-dense layouts (minor dims 1024 / 1024).
    prec = jax.lax.Precision.HIGHEST
    w_eff = jnp.einsum('erd,dc->erc',
                       w2.reshape(z_dim, in_size, z_dim), w1,
                       precision=prec)                          # (z_dim, in_size, out_size)
    w_eff = w_eff.reshape(z_dim, in_size * out_size)            # (z_dim, in_size*out_size)
    b_eff = jnp.dot(b2.reshape(in_size, z_dim), w1, precision=prec) + b1
    b_eff = b_eff.reshape(1, in_size * out_size)                # (1, in_size*out_size)

    kernel = _make_embedding_kernel(h, k, in_size, out_size)

    # Single-step call: whole arrays resident in VMEM (~160 KB total), no grid.
    return pl.pallas_call(
        kernel,
        out_shape=jax.ShapeDtypeStruct((h * in_size, k * out_size), jnp.float32),
        in_specs=[
            pl.BlockSpec(memory_space=pltpu.MemorySpace.VMEM),  # z_stack (h*k, z_dim)
            pl.BlockSpec(memory_space=pltpu.MemorySpace.VMEM),  # W_eff   (z_dim, in*out)
            pl.BlockSpec(memory_space=pltpu.MemorySpace.VMEM),  # b_eff   (1, in*out)
        ],
        out_specs=pl.BlockSpec(memory_space=pltpu.MemorySpace.VMEM),
    )(z_stack, w_eff, b_eff)


# ----------------------------------------------------------------------------
# Pure-JAX reference (mirrors the PyTorch loop exactly, unfolded two layers)
# ----------------------------------------------------------------------------
def embedding_forward_ref(z_stack, w2, b2, w1, b1, *, z_num, z_dim, in_size, out_size):
    h, k = z_num
    prec = jax.lax.Precision.HIGHEST

    def hyper_net(z):
        a = jnp.dot(z, w2, precision=prec) + b2
        a = a.reshape(in_size, z_dim)
        return jnp.dot(a, w1, precision=prec) + b1

    ww = []
    for i in range(h):
        row = [hyper_net(z_stack[i * k + j]) for j in range(k)]
        ww.append(jnp.concatenate(row, axis=1))
    return jnp.concatenate(ww, axis=0)


if __name__ == "__main__":
    # Small deterministic config
    z_num = (2, 3)          # (h, k)
    z_dim = 32
    in_size = 16            # tile rows produced by hyper_net
    out_size = 64           # tile cols produced by hyper_net
    h, k = z_num
    hk = h * k

    key = jax.random.PRNGKey(0)
    k_z, k_w2, k_b2, k_w1, k_b1 = jax.random.split(key, 5)

    # Embedding parameters: h*k vectors z_list_i ~ torch.rand(z_dim), stacked
    # row-major (index i*k + j).
    z_stack = jax.random.uniform(k_z, (hk, z_dim), dtype=jnp.float32)

    # Deterministic hyper_net parameters (two-layer linear HyperNetwork).
    w2 = 0.1 * jax.random.normal(k_w2, (z_dim, in_size * z_dim), dtype=jnp.float32)
    b2 = 0.1 * jax.random.normal(k_b2, (in_size * z_dim,), dtype=jnp.float32)
    w1 = 0.1 * jax.random.normal(k_w1, (z_dim, out_size), dtype=jnp.float32)
    b1 = 0.1 * jax.random.normal(k_b1, (out_size,), dtype=jnp.float32)

    out = embedding_forward(
        z_stack, w2, b2, w1, b1,
        z_num=z_num, z_dim=z_dim, in_size=in_size, out_size=out_size,
    )
    out = jax.block_until_ready(out)

    ref = embedding_forward_ref(
        z_stack, w2, b2, w1, b1,
        z_num=z_num, z_dim=z_dim, in_size=in_size, out_size=out_size,
    )

    assert out.shape == (h * in_size, k * out_size), out.shape
    # Tolerance slightly looser than before: folding the two linear layers
    # changes the reduction order of the hypernet matmuls.
    np.testing.assert_allclose(np.asarray(out), np.asarray(ref), rtol=1e-4, atol=1e-4)
    print("KERNEL_OK")
</pallas_src>

<mosaic_0001>
module attributes {stable_mosaic.version = 11 : i64} {
  func.func @kernel(%arg0: memref<6x32xf32, #tpu.memory_space<vmem>>, %arg1: memref<32x1024xf32, #tpu.memory_space<vmem>>, %arg2: memref<1x1024xf32, #tpu.memory_space<vmem>>, %arg3: memref<32x192xf32, #tpu.memory_space<vmem>>) attributes {dimension_semantics = [], scalar_prefetch = 0 : i64, scratch_operands = 0 : i64, tpu.core_type = #tpu.core_type<tc>} {
    %c0 = arith.constant 0 : index
    %c0_0 = arith.constant 0 : index
    %0 = vector.load %arg0[%c0, %c0_0] : memref<6x32xf32, #tpu.memory_space<vmem>>, vector<6x32xf32>
    %c0_1 = arith.constant 0 : index
    %c0_2 = arith.constant 0 : index
    %1 = vector.load %arg1[%c0_1, %c0_2] : memref<32x1024xf32, #tpu.memory_space<vmem>>, vector<32x1024xf32>
    %cst = arith.constant dense<0.000000e+00> : vector<6x1024xf32>
    %2 = tpu.matmul %0, %1, %cst {dimension_numbers = #tpu.dot_dimension_numbers<[1], [0], [0], [1], [0, 0, 1, 1], [], []>} : vector<6x32xf32>, vector<32x1024xf32>, vector<6x1024xf32> -> vector<6x1024xf32>
    %c0_3 = arith.constant 0 : index
    %c0_4 = arith.constant 0 : index
    %3 = vector.load %arg2[%c0_3, %c0_4] : memref<1x1024xf32, #tpu.memory_space<vmem>>, vector<1x1024xf32>
    %4 = vector.broadcast %3 : vector<1x1024xf32> to vector<6x1024xf32>
    %5 = arith.addf %2, %4 : vector<6x1024xf32>
    %6 = vector.extract_strided_slice %5 {offsets = [0, 0], sizes = [1, 64], strides = [1, 1]} : vector<6x1024xf32> to vector<1x64xf32>
    %7 = vector.extract_strided_slice %5 {offsets = [1, 0], sizes = [1, 64], strides = [1, 1]} : vector<6x1024xf32> to vector<1x64xf32>
    %8 = vector.extract_strided_slice %5 {offsets = [2, 0], sizes = [1, 64], strides = [1, 1]} : vector<6x1024xf32> to vector<1x64xf32>
    %9 = tpu.concatenate %6, %7, %8 in 1 : vector<1x64xf32>, vector<1x64xf32>, vector<1x64xf32> -> vector<1x192xf32>
    %10 = vector.extract_strided_slice %5 {offsets = [0, 64], sizes = [1, 64], strides = [1, 1]} : vector<6x1024xf32> to vector<1x64xf32>
    %11 = vector.extract_strided_slice %5 {offsets = [1, 64], sizes = [1, 64], strides = [1, 1]} : vector<6x1024xf32> to vector<1x64xf32>
    %12 = vector.extract_strided_slice %5 {offsets = [2, 64], sizes = [1, 64], strides = [1, 1]} : vector<6x1024xf32> to vector<1x64xf32>
    %13 = tpu.concatenate %10, %11, %12 in 1 : vector<1x64xf32>, vector<1x64xf32>, vector<1x64xf32> -> vector<1x192xf32>
    %14 = vector.extract_strided_slice %5 {offsets = [0, 128], sizes = [1, 64], strides = [1, 1]} : vector<6x1024xf32> to vector<1x64xf32>
    %15 = vector.extract_strided_slice %5 {offsets = [1, 128], sizes = [1, 64], strides = [1, 1]} : vector<6x1024xf32> to vector<1x64xf32>
    %16 = vector.extract_strided_slice %5 {offsets = [2, 128], sizes = [1, 64], strides = [1, 1]} : vector<6x1024xf32> to vector<1x64xf32>
    %17 = tpu.concatenate %14, %15, %16 in 1 : vector<1x64xf32>, vector<1x64xf32>, vector<1x64xf32> -> vector<1x192xf32>
    %18 = vector.extract_strided_slice %5 {offsets = [0, 192], sizes = [1, 64], strides = [1, 1]} : vector<6x1024xf32> to vector<1x64xf32>
    %19 = vector.extract_strided_slice %5 {offsets = [1, 192], sizes = [1, 64], strides = [1, 1]} : vector<6x1024xf32> to vector<1x64xf32>
    %20 = vector.extract_strided_slice %5 {offsets = [2, 192], sizes = [1, 64], strides = [1, 1]} : vector<6x1024xf32> to vector<1x64xf32>
    %21 = tpu.concatenate %18, %19, %20 in 1 : vector<1x64xf32>, vector<1x64xf32>, vector<1x64xf32> -> vector<1x192xf32>
    %22 = vector.extract_strided_slice %5 {offsets = [0, 256], sizes = [1, 64], strides = [1, 1]} : vector<6x1024xf32> to vector<1x64xf32>
    %23 = vector.extract_strided_slice %5 {offsets = [1, 256], sizes = [1, 64], strides = [1, 1]} : vector<6x1024xf32> to vector<1x64xf32>
    %24 = vector.extract_strided_slice %5 {offsets = [2, 256], sizes = [1, 64], strides = [1, 1]} : vector<6x1024xf32> to vector<1x64xf32>
    %25 = tpu.concatenate %22, %23, %24 in 1 : vector<1x64xf32>, vector<1x64xf32>, vector<1x64xf32> -> vector<1x192xf32>
    %26 = vector.extract_strided_slice %5 {offsets = [0, 320], sizes = [1, 64], strides = [1, 1]} : vector<6x1024xf32> to vector<1x64xf32>
    %27 = vector.extract_strided_slice %5 {offsets = [1, 320], sizes = [1, 64], strides = [1, 1]} : vector<6x1024xf32> to vector<1x64xf32>
    %28 = vector.extract_strided_slice %5 {offsets = [2, 320], sizes = [1, 64], strides = [1, 1]} : vector<6x1024xf32> to vector<1x64xf32>
    %29 = tpu.concatenate %26, %27, %28 in 1 : vector<1x64xf32>, vector<1x64xf32>, vector<1x64xf32> -> vector<1x192xf32>
    %30 = vector.extract_strided_slice %5 {offsets = [0, 384], sizes = [1, 64], strides = [1, 1]} : vector<6x1024xf32> to vector<1x64xf32>
    %31 = vector.extract_strided_slice %5 {offsets = [1, 384], sizes = [1, 64], strides = [1, 1]} : vector<6x1024xf32> to vector<1x64xf32>
    %32 = vector.extract_strided_slice %5 {offsets = [2, 384], sizes = [1, 64], strides = [1, 1]} : vector<6x1024xf32> to vector<1x64xf32>
    %33 = tpu.concatenate %30, %31, %32 in 1 : vector<1x64xf32>, vector<1x64xf32>, vector<1x64xf32> -> vector<1x192xf32>
    %34 = vector.extract_strided_slice %5 {offsets = [0, 448], sizes = [1, 64], strides = [1, 1]} : vector<6x1024xf32> to vector<1x64xf32>
    %35 = vector.extract_strided_slice %5 {offsets = [1, 448], sizes = [1, 64], strides = [1, 1]} : vector<6x1024xf32> to vector<1x64xf32>
    %36 = vector.extract_strided_slice %5 {offsets = [2, 448], sizes = [1, 64], strides = [1, 1]} : vector<6x1024xf32> to vector<1x64xf32>
    %37 = tpu.concatenate %34, %35, %36 in 1 : vector<1x64xf32>, vector<1x64xf32>, vector<1x64xf32> -> vector<1x192xf32>
    %38 = vector.extract_strided_slice %5 {offsets = [0, 512], sizes = [1, 64], strides = [1, 1]} : vector<6x1024xf32> to vector<1x64xf32>
    %39 = vector.extract_strided_slice %5 {offsets = [1, 512], sizes = [1, 64], strides = [1, 1]} : vector<6x1024xf32> to vector<1x64xf32>
    %40 = vector.extract_strided_slice %5 {offsets = [2, 512], sizes = [1, 64], strides = [1, 1]} : vector<6x1024xf32> to vector<1x64xf32>
    %41 = tpu.concatenate %38, %39, %40 in 1 : vector<1x64xf32>, vector<1x64xf32>, vector<1x64xf32> -> vector<1x192xf32>
    %42 = vector.extract_strided_slice %5 {offsets = [0, 576], sizes = [1, 64], strides = [1, 1]} : vector<6x1024xf32> to vector<1x64xf32>
    %43 = vector.extract_strided_slice %5 {offsets = [1, 576], sizes = [1, 64], strides = [1, 1]} : vector<6x1024xf32> to vector<1x64xf32>
    %44 = vector.extract_strided_slice %5 {offsets = [2, 576], sizes = [1, 64], strides = [1, 1]} : vector<6x1024xf32> to vector<1x64xf32>
    %45 = tpu.concatenate %42, %43, %44 in 1 : vector<1x64xf32>, vector<1x64xf32>, vector<1x64xf32> -> vector<1x192xf32>
    %46 = vector.extract_strided_slice %5 {offsets = [0, 640], sizes = [1, 64], strides = [1, 1]} : vector<6x1024xf32> to vector<1x64xf32>
    %47 = vector.extract_strided_slice %5 {offsets = [1, 640], sizes = [1, 64], strides = [1, 1]} : vector<6x1024xf32> to vector<1x64xf32>
    %48 = vector.extract_strided_slice %5 {offsets = [2, 640], sizes = [1, 64], strides = [1, 1]} : vector<6x1024xf32> to vector<1x64xf32>
    %49 = tpu.concatenate %46, %47, %48 in 1 : vector<1x64xf32>, vector<1x64xf32>, vector<1x64xf32> -> vector<1x192xf32>
    %50 = vector.extract_strided_slice %5 {offsets = [0, 704], sizes = [1, 64], strides = [1, 1]} : vector<6x1024xf32> to vector<1x64xf32>
    %51 = vector.extract_strided_slice %5 {offsets = [1, 704], sizes = [1, 64], strides = [1, 1]} : vector<6x1024xf32> to vector<1x64xf32>
    %52 = vector.extract_strided_slice %5 {offsets = [2, 704], sizes = [1, 64], strides = [1, 1]} : vector<6x1024xf32> to vector<1x64xf32>
    %53 = tpu.concatenate %50, %51, %52 in 1 : vector<1x64xf32>, vector<1x64xf32>, vector<1x64xf32> -> vector<1x192xf32>
    %54 = vector.extract_strided_slice %5 {offsets = [0, 768], sizes = [1, 64], strides = [1, 1]} : vector<6x1024xf32> to vector<1x64xf32>
    %55 = vector.extract_strided_slice %5 {offsets = [1, 768], sizes = [1, 64], strides = [1, 1]} : vector<6x1024xf32> to vector<1x64xf32>
    %56 = vector.extract_strided_slice %5 {offsets = [2, 768], sizes = [1, 64], strides = [1, 1]} : vector<6x1024xf32> to vector<1x64xf32>
    %57 = tpu.concatenate %54, %55, %56 in 1 : vector<1x64xf32>, vector<1x64xf32>, vector<1x64xf32> -> vector<1x192xf32>
    %58 = vector.extract_strided_slice %5 {offsets = [0, 832], sizes = [1, 64], strides = [1, 1]} : vector<6x1024xf32> to vector<1x64xf32>
    %59 = vector.extract_strided_slice %5 {offsets = [1, 832], sizes = [1, 64], strides = [1, 1]} : vector<6x1024xf32> to vector<1x64xf32>
    %60 = vector.extract_strided_slice %5 {offsets = [2, 832], sizes = [1, 64], strides = [1, 1]} : vector<6x1024xf32> to vector<1x64xf32>
    %61 = tpu.concatenate %58, %59, %60 in 1 : vector<1x64xf32>, vector<1x64xf32>, vector<1x64xf32> -> vector<1x192xf32>
    %62 = vector.extract_strided_slice %5 {offsets = [0, 896], sizes = [1, 64], strides = [1, 1]} : vector<6x1024xf32> to vector<1x64xf32>
    %63 = vector.extract_strided_slice %5 {offsets = [1, 896], sizes = [1, 64], strides = [1, 1]} : vector<6x1024xf32> to vector<1x64xf32>
    %64 = vector.extract_strided_slice %5 {offsets = [2, 896], sizes = [1, 64], strides = [1, 1]} : vector<6x1024xf32> to vector<1x64xf32>
    %65 = tpu.concatenate %62, %63, %64 in 1 : vector<1x64xf32>, vector<1x64xf32>, vector<1x64xf32> -> vector<1x192xf32>
    %66 = vector.extract_strided_slice %5 {offsets = [0, 960], sizes = [1, 64], strides = [1, 1]} : vector<6x1024xf32> to vector<1x64xf32>
    %67 = vector.extract_strided_slice %5 {offsets = [1, 960], sizes = [1, 64], strides = [1, 1]} : vector<6x1024xf32> to vector<1x64xf32>
    %68 = vector.extract_strided_slice %5 {offsets = [2, 960], sizes = [1, 64], strides = [1, 1]} : vector<6x1024xf32> to vector<1x64xf32>
    %69 = tpu.concatenate %66, %67, %68 in 1 : vector<1x64xf32>, vector<1x64xf32>, vector<1x64xf32> -> vector<1x192xf32>
    %70 = vector.extract_strided_slice %5 {offsets = [3, 0], sizes = [1, 64], strides = [1, 1]} : vector<6x1024xf32> to vector<1x64xf32>
    %71 = vector.extract_strided_slice %5 {offsets = [4, 0], sizes = [1, 64], strides = [1, 1]} : vector<6x1024xf32> to vector<1x64xf32>
    %72 = vector.extract_strided_slice %5 {offsets = [5, 0], sizes = [1, 64], strides = [1, 1]} : vector<6x1024xf32> to vector<1x64xf32>
    %73 = tpu.concatenate %70, %71, %72 in 1 : vector<1x64xf32>, vector<1x64xf32>, vector<1x64xf32> -> vector<1x192xf32>
    %74 = vector.extract_strided_slice %5 {offsets = [3, 64], sizes = [1, 64], strides = [1, 1]} : vector<6x1024xf32> to vector<1x64xf32>
    %75 = vector.extract_strided_slice %5 {offsets = [4, 64], sizes = [1, 64], strides = [1, 1]} : vector<6x1024xf32> to vector<1x64xf32>
    %76 = vector.extract_strided_slice %5 {offsets = [5, 64], sizes = [1, 64], strides = [1, 1]} : vector<6x1024xf32> to vector<1x64xf32>
    %77 = tpu.concatenate %74, %75, %76 in 1 : vector<1x64xf32>, vector<1x64xf32>, vector<1x64xf32> -> vector<1x192xf32>
    %78 = vector.extract_strided_slice %5 {offsets = [3, 128], sizes = [1, 64], strides = [1, 1]} : vector<6x1024xf32> to vector<1x64xf32>
    %79 = vector.extract_strided_slice %5 {offsets = [4, 128], sizes = [1, 64], strides = [1, 1]} : vector<6x1024xf32> to vector<1x64xf32>
    %80 = vector.extract_strided_slice %5 {offsets = [5, 128], sizes = [1, 64], strides = [1, 1]} : vector<6x1024xf32> to vector<1x64xf32>
    %81 = tpu.concatenate %78, %79, %80 in 1 : vector<1x64xf32>, vector<1x64xf32>, vector<1x64xf32> -> vector<1x192xf32>
    %82 = vector.extract_strided_slice %5 {offsets = [3, 192], sizes = [1, 64], strides = [1, 1]} : vector<6x1024xf32> to vector<1x64xf32>
    %83 = vector.extract_strided_slice %5 {offsets = [4, 192], sizes = [1, 64], strides = [1, 1]} : vector<6x1024xf32> to vector<1x64xf32>
    %84 = vector.extract_strided_slice %5 {offsets = [5, 192], sizes = [1, 64], strides = [1, 1]} : vector<6x1024xf32> to vector<1x64xf32>
    %85 = tpu.concatenate %82, %83, %84 in 1 : vector<1x64xf32>, vector<1x64xf32>, vector<1x64xf32> -> vector<1x192xf32>
    %86 = vector.extract_strided_slice %5 {offsets = [3, 256], sizes = [1, 64], strides = [1, 1]} : vector<6x1024xf32> to vector<1x64xf32>
    %87 = vector.extract_strided_slice %5 {offsets = [4, 256], sizes = [1, 64], strides = [1, 1]} : vector<6x1024xf32> to vector<1x64xf32>
    %88 = vector.extract_strided_slice %5 {offsets = [5, 256], sizes = [1, 64], strides = [1, 1]} : vector<6x1024xf32> to vector<1x64xf32>
    %89 = tpu.concatenate %86, %87, %88 in 1 : vector<1x64xf32>, vector<1x64xf32>, vector<1x64xf32> -> vector<1x192xf32>
    %90 = vector.extract_strided_slice %5 {offsets = [3, 320], sizes = [1, 64], strides = [1, 1]} : vector<6x1024xf32> to vector<1x64xf32>
    %91 = vector.extract_strided_slice %5 {offsets = [4, 320], sizes = [1, 64], strides = [1, 1]} : vector<6x1024xf32> to vector<1x64xf32>
    %92 = vector.extract_strided_slice %5 {offsets = [5, 320], sizes = [1, 64], strides = [1, 1]} : vector<6x1024xf32> to vector<1x64xf32>
    %93 = tpu.concatenate %90, %91, %92 in 1 : vector<1x64xf32>, vector<1x64xf32>, vector<1x64xf32> -> vector<1x192xf32>
    %94 = vector.extract_strided_slice %5 {offsets = [3, 384], sizes = [1, 64], strides = [1, 1]} : vector<6x1024xf32> to vector<1x64xf32>
    %95 = vector.extract_strided_slice %5 {offsets = [4, 384], sizes = [1, 64], strides = [1, 1]} : vector<6x1024xf32> to vector<1x64xf32>
    %96 = vector.extract_strided_slice %5 {offsets = [5, 384], sizes = [1, 64], strides = [1, 1]} : vector<6x1024xf32> to vector<1x64xf32>
    %97 = tpu.concatenate %94, %95, %96 in 1 : vector<1x64xf32>, vector<1x64xf32>, vector<1x64xf32> -> vector<1x192xf32>
    %98 = vector.extract_strided_slice %5 {offsets = [3, 448], sizes = [1, 64], strides = [1, 1]} : vector<6x1024xf32> to vector<1x64xf32>
    %99 = vector.extract_strided_slice %5 {offsets = [4, 448], sizes = [1, 64], strides = [1, 1]} : vector<6x1024xf32> to vector<1x64xf32>
    %100 = vector.extract_strided_slice %5 {offsets = [5, 448], sizes = [1, 64], strides = [1, 1]} : vector<6x1024xf32> to vector<1x64xf32>
    %101 = tpu.concatenate %98, %99, %100 in 1 : vector<1x64xf32>, vector<1x64xf32>, vector<1x64xf32> -> vector<1x192xf32>
    %102 = vector.extract_strided_slice %5 {offsets = [3, 512], sizes = [1, 64], strides = [1, 1]} : vector<6x1024xf32> to vector<1x64xf32>
    %103 = vector.extract_strided_slice %5 {offsets = [4, 512], sizes = [1, 64], strides = [1, 1]} : vector<6x1024xf32> to vector<1x64xf32>
    %104 = vector.extract_strided_slice %5 {offsets = [5, 512], sizes = [1, 64], strides = [1, 1]} : vector<6x1024xf32> to vector<1x64xf32>
    %105 = tpu.concatenate %102, %103, %104 in 1 : vector<1x64xf32>, vector<1x64xf32>, vector<1x64xf32> -> vector<1x192xf32>
    %106 = vector.extract_strided_slice %5 {offsets = [3, 576], sizes = [1, 64], strides = [1, 1]} : vector<6x1024xf32> to vector<1x64xf32>
    %107 = vector.extract_strided_slice %5 {offsets = [4, 576], sizes = [1, 64], strides = [1, 1]} : vector<6x1024xf32> to vector<1x64xf32>
    %108 = vector.extract_strided_slice %5 {offsets = [5, 576], sizes = [1, 64], strides = [1, 1]} : vector<6x1024xf32> to vector<1x64xf32>
    %109 = tpu.concatenate %106, %107, %108 in 1 : vector<1x64xf32>, vector<1x64xf32>, vector<1x64xf32> -> vector<1x192xf32>
    %110 = vector.extract_strided_slice %5 {offsets = [3, 640], sizes = [1, 64], strides = [1, 1]} : vector<6x1024xf32> to vector<1x64xf32>
    %111 = vector.extract_strided_slice %5 {offsets = [4, 640], sizes = [1, 64], strides = [1, 1]} : vector<6x1024xf32> to vector<1x64xf32>
    %112 = vector.extract_strided_slice %5 {offsets = [5, 640], sizes = [1, 64], strides = [1, 1]} : vector<6x1024xf32> to vector<1x64xf32>
    %113 = tpu.concatenate %110, %111, %112 in 1 : vector<1x64xf32>, vector<1x64xf32>, vector<1x64xf32> -> vector<1x192xf32>
    %114 = vector.extract_strided_slice %5 {offsets = [3, 704], sizes = [1, 64], strides = [1, 1]} : vector<6x1024xf32> to vector<1x64xf32>
    %115 = vector.extract_strided_slice %5 {offsets = [4, 704], sizes = [1, 64], strides = [1, 1]} : vector<6x1024xf32> to vector<1x64xf32>
    %116 = vector.extract_strided_slice %5 {offsets = [5, 704], sizes = [1, 64], strides = [1, 1]} : vector<6x1024xf32> to vector<1x64xf32>
    %117 = tpu.concatenate %114, %115, %116 in 1 : vector<1x64xf32>, vector<1x64xf32>, vector<1x64xf32> -> vector<1x192xf32>
    %118 = vector.extract_strided_slice %5 {offsets = [3, 768], sizes = [1, 64], strides = [1, 1]} : vector<6x1024xf32> to vector<1x64xf32>
    %119 = vector.extract_strided_slice %5 {offsets = [4, 768], sizes = [1, 64], strides = [1, 1]} : vector<6x1024xf32> to vector<1x64xf32>
    %120 = vector.extract_strided_slice %5 {offsets = [5, 768], sizes = [1, 64], strides = [1, 1]} : vector<6x1024xf32> to vector<1x64xf32>
    %121 = tpu.concatenate %118, %119, %120 in 1 : vector<1x64xf32>, vector<1x64xf32>, vector<1x64xf32> -> vector<1x192xf32>
    %122 = vector.extract_strided_slice %5 {offsets = [3, 832], sizes = [1, 64], strides = [1, 1]} : vector<6x1024xf32> to vector<1x64xf32>
    %123 = vector.extract_strided_slice %5 {offsets = [4, 832], sizes = [1, 64], strides = [1, 1]} : vector<6x1024xf32> to vector<1x64xf32>
    %124 = vector.extract_strided_slice %5 {offsets = [5, 832], sizes = [1, 64], strides = [1, 1]} : vector<6x1024xf32> to vector<1x64xf32>
    %125 = tpu.concatenate %122, %123, %124 in 1 : vector<1x64xf32>, vector<1x64xf32>, vector<1x64xf32> -> vector<1x192xf32>
    %126 = vector.extract_strided_slice %5 {offsets = [3, 896], sizes = [1, 64], strides = [1, 1]} : vector<6x1024xf32> to vector<1x64xf32>
    %127 = vector.extract_strided_slice %5 {offsets = [4, 896], sizes = [1, 64], strides = [1, 1]} : vector<6x1024xf32> to vector<1x64xf32>
    %128 = vector.extract_strided_slice %5 {offsets = [5, 896], sizes = [1, 64], strides = [1, 1]} : vector<6x1024xf32> to vector<1x64xf32>
    %129 = tpu.concatenate %126, %127, %128 in 1 : vector<1x64xf32>, vector<1x64xf32>, vector<1x64xf32> -> vector<1x192xf32>
    %130 = vector.extract_strided_slice %5 {offsets = [3, 960], sizes = [1, 64], strides = [1, 1]} : vector<6x1024xf32> to vector<1x64xf32>
    %131 = vector.extract_strided_slice %5 {offsets = [4, 960], sizes = [1, 64], strides = [1, 1]} : vector<6x1024xf32> to vector<1x64xf32>
    %132 = vector.extract_strided_slice %5 {offsets = [5, 960], sizes = [1, 64], strides = [1, 1]} : vector<6x1024xf32> to vector<1x64xf32>
    %133 = tpu.concatenate %130, %131, %132 in 1 : vector<1x64xf32>, vector<1x64xf32>, vector<1x64xf32> -> vector<1x192xf32>
    %134 = tpu.concatenate %9, %13, %17, %21, %25, %29, %33, %37, %41, %45, %49, %53, %57, %61, %65, %69 in 0 : vector<1x192xf32>, vector<1x192xf32>, vector<1x192xf32>, vector<1x192xf32>, vector<1x192xf32>, vector<1x192xf32>, vector<1x192xf32>, vector<1x192xf32>, vector<1x192xf32>, vector<1x192xf32>, vector<1x192xf32>, vector<1x192xf32>, vector<1x192xf32>, vector<1x192xf32>, vector<1x192xf32>, vector<1x192xf32> -> vector<16x192xf32>
    %135 = tpu.concatenate %73, %77, %81, %85, %89, %93, %97, %101, %105, %109, %113, %117, %121, %125, %129, %133 in 0 : vector<1x192xf32>, vector<1x192xf32>, vector<1x192xf32>, vector<1x192xf32>, vector<1x192xf32>, vector<1x192xf32>, vector<1x192xf32>, vector<1x192xf32>, vector<1x192xf32>, vector<1x192xf32>, vector<1x192xf32>, vector<1x192xf32>, vector<1x192xf32>, vector<1x192xf32>, vector<1x192xf32>, vector<1x192xf32> -> vector<16x192xf32>
    %136 = tpu.concatenate %134, %135 in 0 : vector<16x192xf32>, vector<16x192xf32> -> vector<32x192xf32>
    %c0_5 = arith.constant 0 : index
    %c0_6 = arith.constant 0 : index
    %137 = vector.load %arg3[%c0_5, %c0_6] : memref<32x192xf32, #tpu.memory_space<vmem>>, vector<32x192xf32>
    tpu.vector_store %arg3[%c0_5, %c0_6], %136 {strides = array<i32>} : memref<32x192xf32, #tpu.memory_space<vmem>>, vector<32x192xf32>,
    return
  }
}

</mosaic_0001>

<bundles_post_ra>
// kernel: tpu_custom_call.1
= control target key start
LH: loop header
LB: loop body
LE: loop exit
PB: predicated region body
PF: predicated region fallthrough
CT: control target
= control target key end

     0   :  { %8 = vsyncpa [#allocation3], 0  ;;  %s1202_s0 = inlined_call_operand.hbm [shape: f32[6,32], index: 0, kind: input, shape index: {}]   ;;  %s1203_s1 = inlined_call_operand.hbm [shape: f32[32,1024], index: 1, kind: input, shape index: {}]   ;;  %s1204_s2 = inlined_call_operand.hbm [shape: f32[1,1024], index: 2, kind: input, shape index: {}]   ;;  %s1205_s3 = inlined_call_operand.hbm [shape: f32[32,192], index: 3, kind: output, shape index: {}]  }
   0x1   :  { %9 = vsyncpa [#allocation6], 0 }
   0x2   :  { %10 = vsyncpa [#allocation4], 0  ;;  %s888_s12 = smov [#allocation5]   ;;  %s794_s16 = scalar_lea.hbm %s1203_s1, 4096 }
   0x3   :  { %s26_s13 = sshll.u32 %s888_s12, 4  ;;  %p795_p0 = scmp.ne.s32.totalorder %s1203_s1, %s794_s16  ;;  %s27_s13 = int_to_ptr.vmem [resolvable:$true] %s26_s13 }
   0x4   :  { %p798_p1 = scmp.lt.u32.totalorder %s794_s16, %s1203_s1 }
   0x6   :  { %p800_p2 = pnand %p798_p1, %p795_p0 }
   0x8   :  { %803 = shalt.err (!%p800_p2)
}
   0x9   :  { %s804_s21 = scalar_lea.vmem %s27_s13, 4096  ;;  %p809_p4 = scmp.lt.s32.totalorder %s27_s13, %s27_s13 }
   0xa   :  { %p805_p3 = scmp.ne.s32.totalorder %s27_s13, %s804_s21  ;;  %p810_p5 = scmp.lt.s32.totalorder %s804_s21, %s804_s21 }
   0xc   :  { %p811_p6 = por %p810_p5, %p809_p4 }
   0xe   :  { %p812_p7 = pnand %p811_p6, %p805_p3 }
  0x10   :  { %815 = shalt.err (!%p812_p7)
}
  0x11   :  { %s889_s22 = smov 1024   ;;  %s890_s23 = smov 64  }
  0x12   :  { %32 = dma.hbm_to_vmem [thread:$0]  %s1203_s1, 4096, %s27_s13, [#allocation6], %s889_s22, %s889_s22, %s890_s23  }
  0x13   :  { %s891_s26 = smov [#allocation2]   ;;  %s892_s28 = smov [#allocation7]  }
  0x14   :  { %s17_s27 = sshll.u32 %s891_s26, 4  ;;  %s39_s29 = sshll.u32 %s892_s28, 4  ;;  %s18_s27 = int_to_ptr.vmem [resolvable:$true] %s17_s27  ;;  %s40_s29 = int_to_ptr.vmem [resolvable:$true] %s39_s29 }
  0x15   :  { %s816_s5 = scalar_lea.hbm %s1202_s0, 128 }
  0x16   :  { %p817_p8 = scmp.ne.s32.totalorder %s1202_s0, %s816_s5  ;;  %p820_p9 = scmp.lt.u32.totalorder %s816_s5, %s1202_s0 }
  0x18   :  { %p822_p10 = pnand %p820_p9, %p817_p8 }
  0x1a   :  { %825 = shalt.err (!%p822_p10)
}
  0x1b   :  { %s826_s1 = scalar_lea.vmem %s18_s27, 128  ;;  %p831_p12 = scmp.lt.s32.totalorder %s18_s27, %s18_s27 }
  0x1c   :  { %p827_p11 = scmp.ne.s32.totalorder %s18_s27, %s826_s1  ;;  %p832_p13 = scmp.lt.s32.totalorder %s826_s1, %s826_s1 }
  0x1e   :  { %p833_p0 = por %p832_p13, %p831_p12 }
  0x20   :  { %p834_p1 = pnand %p833_p0, %p827_p11 }
  0x22   :  { %837 = shalt.err (!%p834_p1)
}
  0x23   :  { %20 = dma.hbm_to_vmem [thread:$0]  %s1202_s0, 128, %s18_s27, [#allocation3]  }
  0x24   :  { %s838_s14 = scalar_lea.hbm %s1204_s2, 128 }
  0x25   :  { %p839_p2 = scmp.ne.s32.totalorder %s1204_s2, %s838_s14  ;;  %p842_p3 = scmp.lt.u32.totalorder %s838_s14, %s1204_s2 }
  0x27   :  { %p844_p4 = pnand %p842_p3, %p839_p2 }
  0x29   :  { %847 = shalt.err (!%p844_p4)
}
  0x2a   :  { %s848_s19 = scalar_lea.vmem %s40_s29, 128  ;;  %p853_p6 = scmp.lt.s32.totalorder %s40_s29, %s40_s29 }
  0x2b   :  { %p849_p5 = scmp.ne.s32.totalorder %s40_s29, %s848_s19  ;;  %p854_p7 = scmp.lt.s32.totalorder %s848_s19, %s848_s19 }
  0x2d   :  { %p855_p8 = por %p854_p7, %p853_p6 }
  0x2f   :  { %p856_p9 = pnand %p855_p8, %p849_p5 }
  0x31   :  { %859 = shalt.err (!%p856_p9)
}
  0x32   :  { %42 = dma.hbm_to_vmem [thread:$0]  %s1204_s2, 128, %s40_s29, [#allocation6]  }
  0x33   :  { %882 = dma.done.wait [#allocation3], 128  }
  0x34   :  { %883 = vsyncadd [#allocation3], 4294967168 }
  0x35   :  { %884 = dma.done.wait [#allocation6], 4224  }
  0x36   :  { %885 = vsyncadd [#allocation6], 4294963072  ;;  %v893_v0 = vmov 0.0   ;;  %v54_v1 = vld [vmem:[#allocation5 + $0x8] sm:$0xff]  ;;  %v56_v3 = vld [vmem:[#allocation5 + $0x18] sm:$0xff]  ;;  %vm127_vm0 = vcmask 261120   ;;  %v87_v50 = vlaneseq }
  0x37   :  { %195 = vmatprep.mubr.f32.mxu0 %v893_v0  ;;  %266 = vmatprep.mubr.f32.mxu1 %v893_v0  ;;  %v62_v2 = vld [vmem:[#allocation5 + $0x48] sm:$0xff]  ;;  %v64_v5 = vld [vmem:[#allocation5 + $0x58] sm:$0xff]  ;;  %v53_v6 = vld [vmem:[#allocation5] sm:$0xff]  ;;  %vm422_vm1 = vcmask 523264   ;;  %vm602_vm2 = vcmask 1040384   ;;  %vm605_vm3 = vcmask 1041408  }
  0x38   :  { %v753_v4 = vpack.c.bf16 %v62_v2, %v54_v1  ;;  %v61_v7 = vld [vmem:[#allocation5 + $0x40] sm:$0xff]  ;;  %v761_v8 = vpack.c.bf16 %v64_v5, %v56_v3  ;;  %v55_v10 = vld [vmem:[#allocation5 + $0x10] sm:$0xff]  ;;  %v70_v12 = vld [vmem:[#allocation5 + $0x88] sm:$0xff]  ;;  %v88_v51 = vshrl.u32 %v87_v50, 7  ;;  %vm608_vm4 = vcmask 1042432   ;;  %s894_s2 = smov [#allocation8]  }
  0x39   :  { %v755_v9 = vpack.c.bf16 %v61_v7, %v53_v6  ;;  %v63_v11 = vld [vmem:[#allocation5 + $0x50] sm:$0xff]  ;;  %v78_v14 = vld [vmem:[#allocation5 + $0xc8] sm:$0xff]  ;;  %v72_v15 = vld [vmem:[#allocation5 + $0x98] sm:$0xff]  ;;  %vm611_vm5 = vcmask 1043456   ;;  %vm614_vm6 = vcmask 1044480   ;;  %vm617_vm7 = vcmask 1045504  }
  0x3a   :  { %754 = vmatprep.subr.bf16.mxu0 %v753_v4  ;;  %v763_v13 = vpack.c.bf16 %v63_v11, %v55_v10  ;;  %v80_v16 = vld [vmem:[#allocation5 + $0xd8] sm:$0xff]  ;;  %762 = vmatprep.subr.bf16.mxu1 %v761_v8  ;;  %v757_v17 = vpack.c.bf16 %v78_v14, %v70_v12  ;;  %v69_v19 = vld [vmem:[#allocation5 + $0x80] sm:$0xff]  ;;  %v71_v21 = vld [vmem:[#allocation5 + $0x90] sm:$0xff]  ;;  %v89_v52 = vsub.s32 0, %v88_v51  ;;  %v97_v54 = vsub.s32 2, %v88_v51  ;;  %s736_s21 = sshll.u32 %s894_s2, 4  ;;  %s737_s21 = int_to_ptr.vmem [resolvable:$true] %s736_s21 }
  0x3b   :  { %756 = vmatpush1.bf16.msra.mxu0 %v755_v9  ;;  %v765_v18 = vpack.c.bf16 %v80_v16, %v72_v15  ;;  %v77_v20 = vld [vmem:[#allocation5 + $0xc0] sm:$0xff]  ;;  %v79_v23 = vld [vmem:[#allocation5 + $0xd0] sm:$0xff]  ;;  %v58_v24 = vld [vmem:[#allocation5 + $0x28] sm:$0xff]  ;;  %v93_v55 = vsub.s32 1, %v88_v51  ;;  %v101_v59 = vsub.s32 3, %v88_v51  ;;  %v105_v5 = vsub.s32 4, %v88_v51  ;;  %p865_p11 = scmp.lt.s32.totalorder %s737_s21, %s737_s21 }
  0x3c   :  { %764 = vmatpush1.bf16.msra.mxu1 %v763_v13  ;;  %v759_v22 = vpack.c.bf16 %v77_v20, %v69_v19  ;;  %758 = vmatprep.subr.bf16.mxu0 %v757_v17  ;;  %v767_v25 = vpack.c.bf16 %v79_v23, %v71_v21  ;;  %v52_v26 = vld [vmem:[#allocation2] sm:$0x3f]  ;;  %v66_v27 = vld [vmem:[#allocation5 + $0x68] sm:$0xff]  ;;  %v57_v28 = vld [vmem:[#allocation5 + $0x20] sm:$0xff]  ;;  %v113_v12 = vsub.s32 6, %v88_v51  ;;  %v109_v17 = vsub.s32 5, %v88_v51 }
  0x3d   :  { %766 = vmatprep.subr.bf16.mxu1 %v765_v18  ;;  %v65_v29 = vld [vmem:[#allocation5 + $0x60] sm:$0xff]  ;;  %v769_v30 = vpack.c.bf16 %v66_v27, %v58_v24  ;;  %v74_v31 = vld [vmem:[#allocation5 + $0xa8] sm:$0xff]  ;;  %v60_v33 = vld [vmem:[#allocation5 + $0x38] sm:$0xff]  ;;  %v117_v21 = vsub.s32 7, %v88_v51  ;;  %vm620_vm8 = vcmask 1046528   ;;  %s860_s22 = scalar_lea.vmem %s737_s21, 1024 }
  0x3e   :  { %v82_v32 = vld [vmem:[#allocation5 + $0xe8] sm:$0xff]  ;;  %v771_v34 = vpack.c.bf16 %v65_v29, %v57_v28  ;;  %v68_v35 = vld [vmem:[#allocation5 + $0x78] sm:$0xff]  ;;  %v73_v36 = vld [vmem:[#allocation5 + $0xa0] sm:$0xff]  ;;  %p861_p10 = scmp.ne.s32.totalorder %s737_s21, %s860_s22  ;;  %p866_p12 = scmp.lt.s32.totalorder %s860_s22, %s860_s22 }
  0x3f   :  { %760 = vmatpush1.bf16.msra.mxu0 %v759_v22  ;;  %v81_v37 = vld [vmem:[#allocation5 + $0xe0] sm:$0xff]  ;;  %v773_v38 = vpack.c.bf16 %v82_v32, %v74_v31  ;;  %v777_v39 = vpack.c.bf16 %v68_v35, %v60_v33  ;;  %v59_v40 = vld [vmem:[#allocation5 + $0x30] sm:$0xff]  ;;  %v76_v42 = vld [vmem:[#allocation5 + $0xb8] sm:$0xff] }
  0x40   :  { %768 = vmatpush1.bf16.msra.mxu1 %v767_v25  ;;  %770 = vmatprep.subr.bf16.mxu0 %v769_v30  ;;  %v67_v41 = vld [vmem:[#allocation5 + $0x70] sm:$0xff]  ;;  %v84_v44 = vld [vmem:[#allocation5 + $0xf8] sm:$0xff]  ;;  %v775_v48 = vpack.c.bf16 %v81_v37, %v73_v36  ;;  %v85_v53 = vld [vmem:[#allocation7] sm:$0xff]  ;;  %p867_p13 = por %p866_p12, %p865_p11 }
  0x41   :  { %v779_v43 = vpack.c.bf16 %v67_v41, %v59_v40  ;;  %v75_v45 = vld [vmem:[#allocation5 + $0xb0] sm:$0xff]  ;;  %778 = vmatprep.subr.bf16.mxu1 %v777_v39  ;;  %v781_v47 = vpack.c.bf16 %v84_v44, %v76_v42  ;;  %v90_v56 = vrot.slane %v85_v53, %v89_v52  ;;  %v98_v57 = vrot.slane %v85_v53, %v97_v54 }
  0x42   :  { %v83_v46 = vld [vmem:[#allocation5 + $0xf0] sm:$0xff]  ;;  %749 = vmatmul.mubr.msk.f32.vlgmr.msra.gmra.mrb[0].mxu0 %vm127_vm0, %v52_v26  ;;  %v94_v60 = vrot.slane %v85_v53, %v93_v55  ;;  %v102_v2 = vrot.slane %v85_v53, %v101_v59  ;;  %v106_v11 = vrot.slane %v85_v53, %v105_v5  ;;  %v114_v16 = vrot.slane %v85_v53, %v113_v12  ;;  %p868_p0 = pnand %p867_p13, %p861_p10 }
  0x43   :  { %750 = vmatmul.mubr.msk.f32.vlgmr.msra.gmra.mrb[0].mxu1 %vm127_vm0, %v52_v26  ;;  %772 = vmatpush1.bf16.msra.mxu0 %v771_v34  ;;  %v783_v49 = vpack.c.bf16 %v83_v46, %v75_v45  ;;  %v110_v20 = vrot.slane %v85_v53, %v109_v17  ;;  %v118_v24 = vrot.slane %v85_v53, %v117_v21 }
  0x44   :  { %774 = vmatprep.subr.bf16.mxu0 %v773_v38  ;;  %780 = vmatpush1.bf16.msra.mxu1 %v779_v43 }
  0x45   :  { %337 = vmatprep.mubr.f32.mxu0 %v893_v0  ;;  %782 = vmatprep.subr.bf16.mxu1 %v781_v47 }
  0x46   :  { %408 = vmatprep.mubr.f32.mxu1 %v893_v0 }
  0x47   :  { %776 = vmatpush1.bf16.msra.mxu0 %v775_v48 }
  0x48   :  { %784 = vmatpush1.bf16.msra.mxu1 %v783_v49 }
  0x4a   :  { %751 = vmatmul.mubr.msk.f32.vlgmr.msra.gmra.mrb[2].mxu0 %vm127_vm0, %v52_v26 }
  0x4b   :  { %752 = vmatmul.mubr.msk.f32.vlgmr.msra.gmra.mrb[2].mxu1 %vm127_vm0, %v52_v26 }
 0x115   :  { %v197_v58 = vpop.f32.mrb[0].mxu0 }
 0x116   :  { %v962_v61 = vadd.f32 %v197_v58, %v90_v56  ;;  %v268_v62 = vpop.f32.mrb[0].mxu1  ;;  %v199_v63 = vpop.f32.mrb[1].mxu0 }
 0x117   :  { %v964_v0 = vadd.f32 %v268_v62, %v98_v57  ;;  %v270_v1 = vpop.f32.mrb[1].mxu1  ;;  %v968_v3 = vadd.f32 %v199_v63, %v94_v60 }
 0x118   :  { %424 = vrot.lane.b32.xlu0 %v962_v61, %s890_s23  ;;  %v976_v6 = vadd.f32 %v270_v1, %v102_v2  ;;  %v416_v18 = vrot.slane %v962_v61, 1  ;;  %v999_v22 = vrot.slane %v962_v61, 2 }
 0x119   :  { %v446_v4 = vrot.slane %v964_v0, 1  ;;  %v432_v7 = vrot.slane %v968_v3, 1  ;;  %v1008_v25 = vrot.slane %v964_v0, 2  ;;  %v1017_v27 = vrot.slane %v968_v3, 2 }
 0x11a   :  { %v460_v14 = vrot.slane %v976_v6, 1  ;;  %v1052_v35 = vrot.slane %v976_v6, 2 }
 0x11b   :  { %447 = vrot.lane.b32.xlu1 %v446_v4, %s890_s23 }
 0x11c   :  { %452 = vrot.lane.b32.xlu0 %v964_v0, %s890_s23 }
 0x11d   :  { %v339_v8 = vpop.f32.mrb[2].mxu0 }
 0x11e   :  { %v341_v9 = vpop.f32.mrb[3].mxu0  ;;  %v410_v10 = vpop.f32.mrb[2].mxu1  ;;  %v985_v15 = vadd.f32 %v339_v8, %v106_v11 }
 0x11f   :  { %433 = vrot.lane.b32.xlu1 %v432_v7, %s890_s23  ;;  %v412_v13 = vpop.f32.mrb[3].mxu1  ;;  %v993_v19 = vadd.f32 %v410_v10, %v114_v16  ;;  %v1005_v23 = vadd.f32 %v341_v9, %v110_v20  ;;  %v639_v20 = vrot.slane %v999_v22, 3 }
 0x120   :  { %438 = vrot.lane.b32.xlu0 %v968_v3, %s890_s23  ;;  %v1014_v26 = vadd.f32 %v412_v13, %v118_v24  ;;  %v474_v28 = vrot.slane %v985_v15, 1  ;;  %v1025_v29 = vrot.slane %v985_v15, 2 }
 0x121   :  { %v503_v30 = vrot.slane %v993_v19, 1  ;;  %v1034_v31 = vrot.slane %v993_v19, 2  ;;  %v489_v32 = vrot.slane %v1005_v23, 1  ;;  %v1043_v33 = vrot.slane %v1005_v23, 2 }
 0x122   :  { %v517_v34 = vrot.slane %v1014_v26, 1  ;;  %v1060_v36 = vrot.slane %v1014_v26, 2 }
 0x123   :  { %461 = vrot.lane.b32.xlu1 %v460_v14, %s890_s23 }
 0x124   :  { %466 = vrot.lane.b32.xlu0 %v976_v6, %s890_s23 }
 0x127   :  { %481 = vrot.lane.b32.xlu1 %v985_v15, %s890_s23 }
 0x128   :  { %417 = vrot.lane.b32.xlu0 %v416_v18, %s890_s23 }
 0x12b   :  { %509 = vrot.lane.b32.xlu1 %v993_v19, %s890_s23 }
 0x12c   :  { %428 = vrot.lane.b32.xlu0 %v999_v22, %s890_s23 }
 0x12f   :  { %495 = vrot.lane.b32.xlu1 %v1005_v23, %s890_s23 }
 0x130   :  { %456 = vrot.lane.b32.xlu0 %v1008_v25, %s890_s23 }
 0x133   :  { %523 = vrot.lane.b32.xlu1 %v1014_v26, %s890_s23 }
 0x134   :  { %442 = vrot.lane.b32.xlu0 %v1017_v27, %s890_s23 }
 0x137   :  { %475 = vrot.lane.b32.xlu1 %v474_v28, %s890_s23 }
 0x138   :  { %485 = vrot.lane.b32.xlu0 %v1025_v29, %s890_s23 }
 0x13b   :  { %504 = vrot.lane.b32.xlu1 %v503_v30, %s890_s23 }
 0x13c   :  { %513 = vrot.lane.b32.xlu0 %v1034_v31, %s890_s23 }
 0x13f   :  { %490 = vrot.lane.b32.xlu1 %v489_v32, %s890_s23 }
 0x140   :  { %499 = vrot.lane.b32.xlu0 %v1043_v33, %s890_s23 }
 0x143   :  { %518 = vrot.lane.b32.xlu1 %v517_v34, %s890_s23 }
 0x144   :  { %470 = vrot.lane.b32.xlu0 %v1052_v35, %s890_s23 }
 0x147   :  { %527 = vrot.lane.b32.xlu1 %v1060_v36, %s890_s23 }
 0x18a   :  { %v425_v37 = vpop.permute.xlu0 %424 }
 0x18b   :  { %v430_v44 = vsel %vm422_vm1, %v425_v37, %v416_v18 }
 0x18c   :  { %v533_v48 = vrot.slane %v430_v44, 7  ;;  %v642_v51 = vrot.slane %v430_v44, 2 }
 0x18d   :  { %v448_v38 = vpop.permute.xlu1 %447 }
 0x18e   :  { %v453_v39 = vpop.permute.xlu0 %452  ;;  %v451_v49 = vsel %vm422_vm1, %v964_v0, %v448_v38 }
 0x18f   :  { %v458_v52 = vsel %vm422_vm1, %v453_v39, %v446_v4  ;;  %v548_v59 = vrot.slane %v451_v49, 4  ;;  %v650_v1 = vrot.slane %v451_v49, 7 }
 0x190   :  { %v553_v2 = vrot.slane %v458_v52, 3  ;;  %v654_v5 = vrot.slane %v458_v52, 6 }
 0x191   :  { %v434_v40 = vpop.permute.xlu1 %433 }
 0x192   :  { %v439_v41 = vpop.permute.xlu0 %438  ;;  %v437_v45 = vsel %vm422_vm1, %v968_v3, %v434_v40 }
 0x193   :  { %v444_v46 = vsel %vm422_vm1, %v439_v41, %v432_v7  ;;  %v538_v53 = vrot.slane %v437_v45, 6  ;;  %v646_v60 = vrot.slane %v437_v45, 1  ;;  %v647_v41 = vrot.slane %v1017_v27, 1 }
 0x194   :  { %v543_v55 = vrot.slane %v444_v46, 5  ;;  %v539_v45 = vrot.slane %v1017_v27, 6 }
 0x195   :  { %v462_v42 = vpop.permute.xlu1 %461 }
 0x196   :  { %v467_v43 = vpop.permute.xlu0 %466  ;;  %v465_v56 = vsel %vm422_vm1, %v976_v6, %v462_v42 }
 0x197   :  { %v472_v62 = vsel %vm422_vm1, %v467_v43, %v460_v14  ;;  %v558_v7 = vrot.slane %v465_v56, 2  ;;  %v658_v13 = vrot.slane %v465_v56, 5  ;;  %v559_v56 = vrot.slane %v1052_v35, 2 }
 0x198   :  { %v563_v10 = vrot.slane %v472_v62, 1  ;;  %v662_v21 = vrot.slane %v472_v62, 4 }
 0x199   :  { %v1070_v47 = vpop.permute.xlu1 %481 }
 0x19a   :  { %v418_v50 = vpop.permute.xlu0 %417 }
 0x19b   :  { %v423_v54 = vsel %vm422_vm1, %v962_v61, %v418_v50 }
 0x19c   :  { %v603_v57 = vsel %vm602_vm2, %v423_v54, %v533_v48  ;;  %v638_v58 = vrot.slane %v423_v54, 3  ;;  %v659_v54 = vrot.slane %v1052_v35, 5 }
 0x19d   :  { %v606_v63 = vsel %vm605_vm3, %v603_v57, %v538_v53  ;;  %v510_v0 = vpop.permute.xlu1 %509  ;;  %v549_v53 = vrot.slane %v1008_v25, 4 }
 0x19e   :  { %v609_v61 = vsel %vm608_vm4, %v606_v63, %v543_v55  ;;  %v695_v3 = vsel %vm602_vm2, %v638_v58, %v642_v51  ;;  %v429_v4 = vpop.permute.xlu0 %428 }
 0x19f   :  { %v612_v8 = vsel %vm611_vm5, %v609_v61, %v548_v59  ;;  %v697_v9 = vsel %vm605_vm3, %v695_v3, %v646_v60  ;;  %v643_v12 = vrot.slane %v429_v4, 2  ;;  %v534_v17 = vrot.slane %v429_v4, 7 }
 0x1a0   :  { %v615_v6 = vsel %vm614_vm6, %v612_v8, %v553_v2  ;;  %v699_v11 = vsel %vm608_vm4, %v697_v9, %v444_v46  ;;  %v651_v46 = vrot.slane %v1008_v25, 7  ;;  %v584_v2 = vrot.slane %v1034_v31, 4 }
 0x1a1   :  { %v618_v14 = vsel %vm617_vm7, %v615_v6, %v558_v7  ;;  %v701_v16 = vsel %vm611_vm5, %v699_v11, %v650_v1  ;;  %v496_v18 = vpop.permute.xlu1 %495  ;;  %v696_v42 = vsel %vm602_vm2, %v639_v20, %v643_v12  ;;  %v604_v43 = vsel %vm602_vm2, %v999_v22, %v534_v17 }
 0x1a2   :  { %v621_v24 = vsel %vm620_vm8, %v618_v14, %v563_v10  ;;  %v703_v37 = vsel %vm614_vm6, %v701_v16, %v654_v5  ;;  %v457_v38 = vpop.permute.xlu0 %456  ;;  %v698_v48 = vsel %vm605_vm3, %v696_v42, %v647_v41  ;;  %v607_v55 = vsel %vm605_vm3, %v604_v43, %v539_v45 }
 0x1a3   :  { %v705_v39 = vsel %vm617_vm7, %v703_v37, %v658_v13  ;;  %723 = vst [vmem:[#allocation8] sm:$0xff] %v621_v24  ;;  %v655_v50 = vrot.slane %v457_v38, 6  ;;  %v554_v59 = vrot.slane %v457_v38, 3  ;;  %v668_v1 = vrot.slane %v1025_v29, 3 }
 0x1a4   :  { %v707_v40 = vsel %vm620_vm8, %v705_v39, %v662_v21  ;;  %v574_v3 = vrot.slane %v1043_v33, 6  ;;  %v487_v4 = vsel %vm422_vm1, %v1070_v47, %v474_v28  ;;  %v515_v5 = vsel %vm422_vm1, %v510_v0, %v503_v30 }
 0x1a5   :  { %727 = vst [vmem:[#allocation8 + $0x20] sm:$0xff] %v707_v40  ;;  %v524_v44 = vpop.permute.xlu1 %523  ;;  %v501_v8 = vsel %vm422_vm1, %v496_v18, %v489_v32  ;;  %v594_v28 = vrot.slane %v1060_v36, 2  ;;  %v688_v47 = vrot.slane %v1060_v36, 5  ;;  %v676_v0 = vrot.slane %v1043_v33, 1 }
 0x1a6   :  { %v443_v49 = vpop.permute.xlu0 %442  ;;  %v1137_v9 = vsel %vm422_vm1, %v524_v44, %v517_v34  ;;  %v680_v11 = vrot.slane %v1034_v31, 7  ;;  %v568_v12 = vrot.slane %v487_v4, 7  ;;  %v671_v32 = vrot.slane %v487_v4, 2 }
 0x1a7   :  { %v544_v51 = vrot.slane %v443_v49, 5  ;;  %v700_v52 = vsel %vm608_vm4, %v698_v48, %v443_v49  ;;  %v588_v14 = vrot.slane %v515_v5, 3  ;;  %v683_v16 = vrot.slane %v515_v5, 6 }
 0x1a8   :  { %v702_v22 = vsel %vm611_vm5, %v700_v52, %v651_v46  ;;  %v578_v17 = vrot.slane %v501_v8, 5  ;;  %v598_v18 = vrot.slane %v1137_v9, 1  ;;  %v691_v20 = vrot.slane %v1137_v9, 4 }
 0x1a9   :  { %v610_v27 = vsel %vm608_vm4, %v607_v55, %v544_v51  ;;  %v704_v57 = vsel %vm614_vm6, %v702_v22, %v655_v50  ;;  %v476_v58 = vpop.permute.xlu1 %475 }
 0x1aa   :  { %v613_v60 = vsel %vm611_vm5, %v610_v27, %v549_v53  ;;  %v480_v62 = vsel %vm422_vm1, %v985_v15, %v476_v58  ;;  %v486_v25 = vpop.permute.xlu0 %485  ;;  %v1118_v63 = vsel %vm617_vm7, %v704_v57, %v659_v54 }
 0x1ab   :  { %v569_v35 = vrot.slane %v486_v25, 7  ;;  %v672_v61 = vrot.slane %v486_v25, 2  ;;  %v616_v7 = vsel %vm614_vm6, %v613_v60, %v554_v59  ;;  %v667_v10 = vrot.slane %v480_v62, 3 }
 0x1ac   :  { %v619_v6 = vsel %vm617_vm7, %v616_v7, %v559_v56  ;;  %v623_v21 = vsel %vm602_vm2, %v480_v62, %v568_v12 }
 0x1ad   :  { %v505_v15 = vpop.permute.xlu1 %504  ;;  %v624_v13 = vsel %vm602_vm2, %v1025_v29, %v569_v35  ;;  %v710_v34 = vsel %vm602_vm2, %v668_v1, %v672_v61  ;;  %v709_v33 = vsel %vm602_vm2, %v667_v10, %v671_v32 }
 0x1ae   :  { %v514_v30 = vpop.permute.xlu0 %513  ;;  %v508_v31 = vsel %vm422_vm1, %v993_v19, %v505_v15  ;;  %v626_v38 = vsel %vm605_vm3, %v624_v13, %v574_v3  ;;  %v712_v39 = vsel %vm605_vm3, %v710_v34, %v676_v0 }
 0x1af   :  { %v684_v37 = vrot.slane %v514_v30, 6  ;;  %v583_v45 = vrot.slane %v508_v31, 4  ;;  %v679_v46 = vrot.slane %v508_v31, 7  ;;  %v589_v48 = vrot.slane %v514_v30, 3 }
 0x1b1   :  { %v491_v24 = vpop.permute.xlu1 %490 }
 0x1b2   :  { %v494_v29 = vsel %vm422_vm1, %v1005_v23, %v491_v24  ;;  %v500_v40 = vpop.permute.xlu0 %499 }
 0x1b3   :  { %v573_v41 = vrot.slane %v494_v29, 6  ;;  %v675_v42 = vrot.slane %v494_v29, 1  ;;  %v579_v43 = vrot.slane %v500_v40, 5  ;;  %v714_v44 = vsel %vm608_vm4, %v712_v39, %v500_v40 }
 0x1b4   :  { %v716_v19 = vsel %vm611_vm5, %v714_v44, %v680_v11 }
 0x1b5   :  { %v625_v49 = vsel %vm605_vm3, %v623_v21, %v573_v41  ;;  %v711_v50 = vsel %vm605_vm3, %v709_v33, %v675_v42  ;;  %v628_v23 = vsel %vm608_vm4, %v626_v38, %v579_v43  ;;  %v718_v51 = vsel %vm614_vm6, %v716_v19, %v684_v37  ;;  %v519_v52 = vpop.permute.xlu1 %518 }
 0x1b6   :  { %v627_v53 = vsel %vm608_vm4, %v625_v49, %v578_v17  ;;  %v713_v54 = vsel %vm608_vm4, %v711_v50, %v501_v8  ;;  %v630_v55 = vsel %vm611_vm5, %v628_v23, %v584_v2  ;;  %v522_v22 = vsel %vm422_vm1, %v1014_v26, %v519_v52  ;;  %v471_v56 = vpop.permute.xlu0 %470 }
 0x1b7   :  { %v629_v27 = vsel %vm611_vm5, %v627_v53, %v583_v45  ;;  %v715_v57 = vsel %vm611_vm5, %v713_v54, %v679_v46  ;;  %v593_v58 = vrot.slane %v522_v22, 2  ;;  %v687_v59 = vrot.slane %v522_v22, 5 }
 0x1b8   :  { %v631_v60 = vsel %vm614_vm6, %v629_v27, %v588_v14  ;;  %v717_v62 = vsel %vm614_vm6, %v715_v57, %v683_v16  ;;  %v564_v25 = vrot.slane %v471_v56, 1  ;;  %v663_v1 = vrot.slane %v471_v56, 4 }
 0x1b9   :  { %v633_v35 = vsel %vm617_vm7, %v631_v60, %v593_v58  ;;  %v719_v2 = vsel %vm617_vm7, %v717_v62, %v687_v59  ;;  %v528_v61 = vpop.permute.xlu1 %527  ;;  %v632_v26 = vsel %vm614_vm6, %v630_v55, %v589_v48  ;;  %v720_v3 = vsel %vm617_vm7, %v718_v51, %v688_v47 }
 0x1ba   :  { %v635_v4 = vsel %vm620_vm8, %v633_v35, %v598_v18  ;;  %v721_v5 = vsel %vm620_vm8, %v719_v2, %v691_v20  ;;  %v622_v7 = vsel %vm620_vm8, %v619_v6, %v564_v25  ;;  %v708_v8 = vsel %vm620_vm8, %v1118_v63, %v663_v1 }
 0x1bb   :  { %725 = vst [vmem:[#allocation8 + $0x10] sm:$0xff] %v635_v4  ;;  %729 = vst [vmem:[#allocation8 + $0x30] sm:$0xff] %v721_v5  ;;  %v599_v9 = vrot.slane %v528_v61, 1  ;;  %v634_v10 = vsel %vm617_vm7, %v632_v26, %v594_v28  ;;  %v692_v15 = vrot.slane %v528_v61, 4 }
 0x1bc   :  { %724 = vst.msk [vmem:[#allocation8 + $0x8] sm:$0xff] %vm422_vm1, %v622_v7  ;;  %728 = vst.msk [vmem:[#allocation8 + $0x28] sm:$0xff] %vm422_vm1, %v708_v8 }
 0x1bd   :  { %v636_v47 = vsel %vm620_vm8, %v634_v10, %v599_v9  ;;  %v722_v6 = vsel %vm620_vm8, %v720_v3, %v692_v15 }
 0x1be   :  { %726 = vst.msk [vmem:[#allocation8 + $0x18] sm:$0xff] %vm422_vm1, %v636_v47  ;;  %730 = vst.msk [vmem:[#allocation8 + $0x38] sm:$0xff] %vm422_vm1, %v722_v6 }
 0x1bf   :  { %871 = shalt.err (!%p868_p0)
}
 0x1c0   :  { %s872_s25 = scalar_lea.hbm %s1205_s3, 1024 }
 0x1c1   :  { %p873_p1 = scmp.ne.s32.totalorder %s1205_s3, %s872_s25  ;;  %p876_p2 = scmp.lt.u32.totalorder %s872_s25, %s1205_s3 }
 0x1c3   :  { %p878_p3 = pnand %p876_p2, %p873_p1 }
 0x1c5   :  { %881 = shalt.err (!%p878_p3)
}
 0x1c6   :  { %s895_s30 = smov 256   ;;  %s896_s4 = smov 16  }
 0x1c7   :  { %742 = dma.vmem_to_hbm [thread:$0]  %s737_s21, 1024, %s1205_s3, [#allocation4], %s895_s30, %s895_s30, %s896_s4  }
 0x1c8   :  { %886 = dma.done.wait [#allocation4], 1024  }
 0x1c9   :  { %887 = vsyncadd [#allocation4], 4294966272 }
 0x1ca   :  { %746 = vsyncpa [#allocation3], 1 }
 0x1cb   :  { %747 = vsyncpa [#allocation6], 1 }
 0x1cc   :  { %748 = vsyncpa [#allocation4], 1 }

</bundles_post_ra>
